<compile_context>
chip_gen: v7x
topology: tpu7x:2x2x1
jax: 0.10.0
libtpu: 0.0.40
codegen_flags: <defaults>
</compile_context>

<pallas_src>
import functools

import jax
import jax.numpy as jnp
from jax.experimental import pallas as pl
from jax.experimental.pallas import tpu as pltpu


def _round_up(x, m):
    return (x + m - 1) // m * m


# ----------------------------------------------------------------------------
# Kernel
# ----------------------------------------------------------------------------
def _mlp_kernel(x_ref, p_ref, o_ref, *, layout):
    """Fused 3-layer MLP: out = relu(relu(x@W1+b1)@W2+b2)@W3+b3.

    x_ref : [TB, D_in]       unpadded batch tile of inputs (f32)
    p_ref : [R, C]           packed bf16 parameter slab (VMEM-resident)
    o_ref : [TB, D_out_pad]  lane-dense padded f32 output tile
    layout: static per-layer tuple (w_row_off, k_rows, b_row_off, n_out).
    """
    h = x_ref[...]                                        # f32 activations
    n_layers = len(layout)
    for li, (w_off, k_rows, b_off, n_out) in enumerate(layout):
        w = p_ref[w_off:w_off + k_rows, :n_out]           # bf16, static slice
        b = p_ref[b_off:b_off + 1, :n_out].astype(jnp.float32)
        # bf16 operands on the MXU, f32 accumulation; bias add stays f32 (VPU).
        h = jnp.dot(h.astype(jnp.bfloat16), w,
                    preferred_element_type=jnp.float32) + b
        if li < n_layers - 1:
            h = jnp.maximum(h, 0.0)                       # ReLU in f32
    o_ref[...] = h                                        # f32, 128-lane store


# ----------------------------------------------------------------------------
# Parameter packing (done once; reuse the slab across calls in an acting loop)
# ----------------------------------------------------------------------------
def pack_params(params, *, param_dtype=jnp.bfloat16):
    """Pack w1,b1,w2,b2,w3,b3 into one zero-padded [R, C] slab.

    Returns (slab, layout, d_out_pad).
    """
    dims = [params["w1"].shape[0], params["w1"].shape[1],
            params["w2"].shape[1], params["w3"].shape[1]]
    sub = 16 if param_dtype == jnp.bfloat16 else 8        # sublane tile rows
    # Contraction rows the kernel actually reads per layer: D_in unpadded for
    # layer 1 (x is not feature-padded), lane-padded hidden width otherwise.
    k_rows = [dims[0], _round_up(dims[1], 128), _round_up(dims[2], 128)]
    out_pad = [_round_up(dims[1], 128), _round_up(dims[2], 128),
               _round_up(dims[3], 128)]
    width = max(out_pad)

    blocks, layout, row = [], [], 0
    for i in range(3):
        w = params[f"w{i + 1}"].astype(jnp.float32)
        b = params[f"b{i + 1}"].astype(jnp.float32).reshape(1, -1)
        w_block_rows = _round_up(k_rows[i], sub)          # keep offsets aligned
        wp = jnp.zeros((w_block_rows, width), jnp.float32)
        wp = wp.at[:w.shape[0], :w.shape[1]].set(w)
        bp = jnp.zeros((sub, width), jnp.float32)
        bp = bp.at[:1, :b.shape[1]].set(b)
        w_off = row
        row += w_block_rows
        b_off = row
        row += sub
        layout.append((w_off, k_rows[i], b_off, out_pad[i]))
        blocks.append(wp)
        blocks.append(bp)

    slab = jnp.concatenate(blocks, axis=0).astype(param_dtype)
    return slab, tuple(layout), out_pad[-1]


# ----------------------------------------------------------------------------
# Forward wrappers
# ----------------------------------------------------------------------------
def mlp_forward_packed(x, slab, layout, d_out_pad, output_dim, *,
                       tile_batch=1024):
    """Run the fused MLP kernel on a pre-packed parameter slab."""
    B, D_in = x.shape
    assert D_in == layout[0][1], "x feature dim does not match packed params"
    x = x.astype(jnp.float32)

    # Adaptive batch tile (always a multiple of 8): at least two grid steps
    # once the padded batch has >= 16 rows so the "parallel" axis feeds both
    # v7x TensorCores; minimal round-up waste (300 -> 2 x 152, not 512);
    # capped at tile_batch (per-grid-step overhead ~0.35us, VMEM use is tiny).
    b_pad8 = _round_up(B, 8)
    if b_pad8 <= 8:
        tb = 8
    else:
        tb = min(_round_up(tile_batch, 8), _round_up(pl.cdiv(b_pad8, 2), 8))
    grid_b = pl.cdiv(B, tb)
    rows_out = grid_b * tb                                # padded output rows

    kernel = functools.partial(_mlp_kernel, layout=layout)
    flops = 2 * rows_out * sum(k * n for (_, k, _, n) in layout)
    bytes_accessed = int(x.size * 4 + slab.size * slab.dtype.itemsize
                         + rows_out * d_out_pad * 4)

    out_p = pl.pallas_call(
        kernel,
        out_shape=jax.ShapeDtypeStruct((rows_out, d_out_pad), jnp.float32),
        grid_spec=pltpu.PrefetchScalarGridSpec(
            num_scalar_prefetch=0,
            grid=(grid_b,),
            in_specs=[
                # Unpadded x: last block dim == full array dim satisfies the
                # (8,128) rule; boundary rows past B are never consumed
                # (their output rows are sliced off below).
                pl.BlockSpec((tb, D_in), lambda i: (i, 0)),
                # Parameter slab: constant index_map -> resident in VMEM,
                # never re-fetched across grid steps.
                pl.BlockSpec(slab.shape, lambda i: (0, 0)),
            ],
            out_specs=pl.BlockSpec((tb, d_out_pad), lambda i: (i, 0)),
        ),
        compiler_params=pltpu.CompilerParams(
            dimension_semantics=("parallel",),            # megacore batch split
        ),
        cost_estimate=pl.CostEstimate(
            flops=flops, transcendentals=0, bytes_accessed=bytes_accessed),
    )(x, slab)

    return out_p[:B, :output_dim]


def mlp_forward(x, params, *, tile_batch=1024):
    """Convenience wrapper: pack params then run the kernel.

    x: [B, input_dim] float32
    params: dict with w1 [D_in,H1], b1 [1,H1], w2 [H1,H2], b2 [1,H2],
            w3 [H2,D_out], b3 [1,D_out]
    """
    slab, layout, d_out_pad = pack_params(params)
    output_dim = params["w3"].shape[1]
    return mlp_forward_packed(x, slab, layout, d_out_pad, output_dim,
                              tile_batch=tile_batch)


# ----------------------------------------------------------------------------
# Init + references + self-test
# ----------------------------------------------------------------------------
def init_params(key, input_dim, hidden_layer_tuple, output_dim):
    """Deterministic init mimicking nn.Linear's U(-1/sqrt(fan_in), 1/sqrt(fan_in))."""
    dims = [input_dim, hidden_layer_tuple[0], hidden_layer_tuple[1], output_dim]
    params = {}
    keys = jax.random.split(key, 6)
    for i in range(3):
        fan_in, fan_out = dims[i], dims[i + 1]
        bound = 1.0 / jnp.sqrt(jnp.float32(fan_in))
        w = jax.random.uniform(keys[2 * i], (fan_in, fan_out), jnp.float32,
                               minval=-bound, maxval=bound)
        b = jax.random.uniform(keys[2 * i + 1], (1, fan_out), jnp.float32,
                               minval=-bound, maxval=bound)
        params[f"w{i + 1}"] = w
        params[f"b{i + 1}"] = b
    return params


def _reference_f32(x, params):
    hp = jax.lax.Precision.HIGHEST
    h = jnp.maximum(jnp.dot(x, params["w1"], precision=hp) + params["b1"], 0.0)
    h = jnp.maximum(jnp.dot(h, params["w2"], precision=hp) + params["b2"], 0.0)
    return jnp.dot(h, params["w3"], precision=hp) + params["b3"]


def _reference_bf16(x, params):
    """Emulates the kernel numerics: bf16 matmul operands, f32 accumulation."""
    def dot_bf16(a, w):
        return jnp.dot(a.astype(jnp.bfloat16), w.astype(jnp.bfloat16),
                       preferred_element_type=jnp.float32)
    def bias(b):
        return b.astype(jnp.bfloat16).astype(jnp.float32)
    h = jnp.maximum(dot_bf16(x, params["w1"]) + bias(params["b1"]), 0.0)
    h = jnp.maximum(dot_bf16(h, params["w2"]) + bias(params["b2"]), 0.0)
    return dot_bf16(h, params["w3"]) + bias(params["b3"])


if __name__ == "__main__":
    # Small env-like dims: observation_dim=4 (e.g. CartPole), 2 actions.
    input_dim = 4
    hidden = (16, 8)
    output_dim = 2

    key = jax.random.PRNGKey(0)
    k_x1, k_x2, k_p = jax.random.split(key, 3)
    params = init_params(k_p, input_dim, hidden, output_dim)

    # Pack once (acting-loop / training-loop reuse pattern).
    slab, layout, d_out_pad = pack_params(params)

    # --- Case 1: tiny acting-loop batch (B=8) ---
    x_small = jax.random.normal(k_x1, (8, input_dim), dtype=jnp.float32)
    out_small = mlp_forward_packed(x_small, slab, layout, d_out_pad, output_dim)
    out_small = jax.block_until_ready(out_small)
    assert out_small.shape == (8, output_dim)
    assert jnp.allclose(out_small, _reference_bf16(x_small, params),
                        atol=1e-2, rtol=1e-2)
    assert jnp.allclose(out_small, _reference_f32(x_small, params),
                        atol=1e-1, rtol=1e-1)

    # --- Case 2: replay-style batch (non-divisible; exercises adaptive tiling:
    #     B=300 -> TB=152, grid=(2,), 304 padded output rows) ---
    x_big = jax.random.normal(k_x2, (300, input_dim), dtype=jnp.float32)
    out_big = mlp_forward_packed(x_big, slab, layout, d_out_pad, output_dim)
    out_big = jax.block_until_ready(out_big)
    assert out_big.shape == (300, output_dim)
    assert jnp.allclose(out_big, _reference_bf16(x_big, params),
                        atol=1e-2, rtol=1e-2)
    assert jnp.allclose(out_big, _reference_f32(x_big, params),
                        atol=1e-1, rtol=1e-1)

    print("KERNEL_OK")
</pallas_src>

<mosaic_0001>
module attributes {stable_mosaic.version = 11 : i64} {
  func.func @_mlp_kernel(%arg0: i32, %arg1: memref<8x4xf32, #tpu.memory_space<vmem>>, %arg2: memref<320x128xbf16, #tpu.memory_space<vmem>>, %arg3: memref<8x128xf32, #tpu.memory_space<vmem>>) attributes {dimension_semantics = [#tpu.dimension_semantics<parallel>], iteration_bounds = array<i64: 1>, scalar_prefetch = 0 : i64, scratch_operands = 0 : i64, tpu.core_type = #tpu.core_type<tc>, window_params = [{transform_indices = @transform_0, window_bounds = array<i64: 8, 4>}, {pipeline_mode = #tpu.pipeline_mode<synchronous>, transform_indices = @transform_1, window_bounds = array<i64: 320, 128>}, {transform_indices = @transform_2, window_bounds = array<i64: 8, 128>}]} {
    %c0 = arith.constant 0 : index
    %c0_0 = arith.constant 0 : index
    %0 = vector.load %arg1[%c0, %c0_0] : memref<8x4xf32, #tpu.memory_space<vmem>>, vector<8x4xf32>
    %c0_1 = arith.constant 0 : index
    %c0_2 = arith.constant 0 : index
    %1 = vector.load %arg2[%c0_1, %c0_2] : memref<320x128xbf16, #tpu.memory_space<vmem>>, vector<4x128xbf16>
    %c16 = arith.constant 16 : index
    %c0_3 = arith.constant 0 : index
    %2 = vector.load %arg2[%c16, %c0_3] : memref<320x128xbf16, #tpu.memory_space<vmem>>, vector<1x128xbf16>
    %3 = arith.extf %2 : vector<1x128xbf16> to vector<1x128xf32>
    %4 = arith.truncf %0 : vector<8x4xf32> to vector<8x4xbf16>
    %cst = arith.constant dense<0.000000e+00> : vector<8x128xf32>
    %5 = tpu.matmul %4, %1, %cst {dimension_numbers = #tpu.dot_dimension_numbers<[1], [0], [0], [1], [0, 0, 1, 1], [], []>} : vector<8x4xbf16>, vector<4x128xbf16>, vector<8x128xf32> -> vector<8x128xf32>
    %6 = vector.broadcast %3 : vector<1x128xf32> to vector<8x128xf32>
    %7 = arith.addf %5, %6 : vector<8x128xf32>
    %cst_4 = arith.constant 0.000000e+00 : f32
    %8 = vector.broadcast %cst_4 : f32 to vector<8x128xf32>
    %9 = arith.maximumf %7, %8 : vector<8x128xf32>
    %c32 = arith.constant 32 : index
    %c0_5 = arith.constant 0 : index
    %10 = vector.load %arg2[%c32, %c0_5] : memref<320x128xbf16, #tpu.memory_space<vmem>>, vector<128x128xbf16>
    %c160 = arith.constant 160 : index
    %c0_6 = arith.constant 0 : index
    %11 = vector.load %arg2[%c160, %c0_6] : memref<320x128xbf16, #tpu.memory_space<vmem>>, vector<1x128xbf16>
    %12 = arith.extf %11 : vector<1x128xbf16> to vector<1x128xf32>
    %13 = arith.truncf %9 : vector<8x128xf32> to vector<8x128xbf16>
    %cst_7 = arith.constant dense<0.000000e+00> : vector<8x128xf32>
    %14 = tpu.matmul %13, %10, %cst_7 {dimension_numbers = #tpu.dot_dimension_numbers<[1], [0], [0], [1], [0, 0, 1, 1], [], []>} : vector<8x128xbf16>, vector<128x128xbf16>, vector<8x128xf32> -> vector<8x128xf32>
    %15 = vector.broadcast %12 : vector<1x128xf32> to vector<8x128xf32>
    %16 = arith.addf %14, %15 : vector<8x128xf32>
    %cst_8 = arith.constant 0.000000e+00 : f32
    %17 = vector.broadcast %cst_8 : f32 to vector<8x128xf32>
    %18 = arith.maximumf %16, %17 : vector<8x128xf32>
    %c176 = arith.constant 176 : index
    %c0_9 = arith.constant 0 : index
    %19 = vector.load %arg2[%c176, %c0_9] : memref<320x128xbf16, #tpu.memory_space<vmem>>, vector<128x128xbf16>
    %c304 = arith.constant 304 : index
    %c0_10 = arith.constant 0 : index
    %20 = vector.load %arg2[%c304, %c0_10] : memref<320x128xbf16, #tpu.memory_space<vmem>>, vector<1x128xbf16>
    %21 = arith.extf %20 : vector<1x128xbf16> to vector<1x128xf32>
    %22 = arith.truncf %18 : vector<8x128xf32> to vector<8x128xbf16>
    %cst_11 = arith.constant dense<0.000000e+00> : vector<8x128xf32>
    %23 = tpu.matmul %22, %19, %cst_11 {dimension_numbers = #tpu.dot_dimension_numbers<[1], [0], [0], [1], [0, 0, 1, 1], [], []>} : vector<8x128xbf16>, vector<128x128xbf16>, vector<8x128xf32> -> vector<8x128xf32>
    %24 = vector.broadcast %21 : vector<1x128xf32> to vector<8x128xf32>
    %25 = arith.addf %23, %24 : vector<8x128xf32>
    %c0_12 = arith.constant 0 : index
    %c0_13 = arith.constant 0 : index
    %26 = vector.load %arg3[%c0_12, %c0_13] : memref<8x128xf32, #tpu.memory_space<vmem>>, vector<8x128xf32>
    tpu.vector_store %arg3[%c0_12, %c0_13], %25 {strides = array<i32>} : memref<8x128xf32, #tpu.memory_space<vmem>>, vector<8x128xf32>,
    return
  }
  func.func @transform_0(%arg0: i32) -> (i32, i32) {
    %c0_i32 = arith.constant 0 : i32
    %c0_i32_0 = arith.constant 0 : i32
    return %arg0, %c0_i32 : i32, i32
  }
  func.func @transform_1(%arg0: i32) -> (i32, i32) {
    %c0_i32 = arith.constant 0 : i32
    %c0_i32_0 = arith.constant 0 : i32
    %c0_i32_1 = arith.constant 0 : i32
    return %c0_i32, %c0_i32_0 : i32, i32
  }
  func.func @transform_2(%arg0: i32) -> (i32, i32) {
    %c0_i32 = arith.constant 0 : i32
    %c0_i32_0 = arith.constant 0 : i32
    return %arg0, %c0_i32 : i32, i32
  }
}

</mosaic_0001>

<bundles_post_ra>
// kernel: tpu_custom_call.1
= control target key start
LH: loop header
LB: loop body
LE: loop exit
PB: predicated region body
PF: predicated region fallthrough
CT: control target
= control target key end

     0   :  { %7 = vsyncpa [#allocation3], 0  ;;  %s548_s0 = inlined_call_operand.vmem [shape: f32[8,4], index: 0, kind: input, shape index: {}]   ;;  %s549_s1 = inlined_call_operand.hbm [shape: bf16[320,128], index: 1, kind: input, shape index: {}]   ;;  %s550_s2 = inlined_call_operand.hbm [shape: f32[8,128], index: 2, kind: output, shape index: {}]  }
   0x1   :  { %8 = vsyncpa [#allocation4], 0  ;;  %s477_s9 = smov [#allocation2]   ;;  %s429_s13 = scalar_lea.hbm %s549_s1, 2560 }
   0x2   :  { %s16_s10 = sshll.u32 %s477_s9, 4  ;;  %p430_p0 = scmp.ne.s32.totalorder %s549_s1, %s429_s13  ;;  %s17_s10 = int_to_ptr.vmem [resolvable:$true] %s16_s10 }
   0x3   :  { %p433_p1 = scmp.lt.u32.totalorder %s429_s13, %s549_s1 }
   0x5   :  { %p435_p2 = pnand %p433_p1, %p430_p0 }
   0x7   :  { %438 = shalt.err (!%p435_p2)
}
   0x8   :  { %s439_s18 = scalar_lea.vmem %s17_s10, 2560  ;;  %p444_p4 = scmp.lt.s32.totalorder %s17_s10, %s17_s10 }
   0x9   :  { %p440_p3 = scmp.ne.s32.totalorder %s17_s10, %s439_s18  ;;  %p445_p5 = scmp.lt.s32.totalorder %s439_s18, %s439_s18 }
   0xb   :  { %p446_p6 = por %p445_p5, %p444_p4 }
   0xd   :  { %p447_p7 = pnand %p446_p6, %p440_p3 }
   0xf   :  { %450 = shalt.err (!%p447_p7)
}
  0x10   :  { %s478_s19 = smov 64   ;;  %s479_s20 = smov 4  }
  0x11   :  { %22 = dma.hbm_to_vmem [thread:$0]  %s549_s1, 2560, %s17_s10, [#allocation3], %s478_s19, %s478_s19, %s479_s20  }
  0x12   :  { %473 = dma.done.wait [#allocation3], 2560  }
  0x13   :  { %474 = vsyncadd [#allocation3], 4294964736  ;;  %v480_v0 = vmov 0.0   ;;  %vm481_vm0 = vmmov 0   ;;  %vm40_vm1 = vcmask 1041408   ;;  %v27_v2 = vld [vmem:[%s548_s0] sm:$0xff]  ;;  %v32_v19 = vlaneseq }
  0x14   :  { %361 = vmatprep.subr.bf16.mxu0 %v480_v0  ;;  %363 = vmatprep.mubr.msk.bf16.mxu0 %vm481_vm0, %v480_v0  ;;  %v28_v1 = vld [vmem:[#allocation2] sm:$0x3]  ;;  %v31_v4 = vpack.c.bf16 %v27_v2, %v27_v2  ;;  %v413_v5 = vld [vmem:[#allocation2 + $0x10] sm:$0xff]   ;;  %vm36_vm2 = vcmask 31744   ;;  %v414_v6 = vld [vmem:[#allocation2 + $0x18] sm:$0xff]   ;;  %s482_s0 = smov [#allocation5]  }
  0x15   :  { %367 = vmatprep.subr.bf16.mxu1 %v480_v0  ;;  %383 = vmatprep.mubr.msk.bf16.mxu1 %vm481_vm0, %v480_v0  ;;  %v42_v3 = vsel %vm40_vm1, %v28_v1, 0  ;;  %v415_v7 = vld [vmem:[#allocation2 + $0x20] sm:$0xff]   ;;  %v416_v8 = vld [vmem:[#allocation2 + $0x28] sm:$0xff]   ;;  %v417_v9 = vld [vmem:[#allocation2 + $0x30] sm:$0xff]   ;;  %v33_v20 = vshrl.u32 %v32_v19, 7  ;;  %s315_s1 = sshll.u32 %s482_s0, 4  ;;  %s316_s1 = int_to_ptr.vmem [resolvable:$true] %s315_s1 }
  0x16   :  { %362 = vmatpush3.bf16.msra.mxu0 %v42_v3  ;;  %368 = vmatpush3.bf16.msra.mxu1 %v413_v5  ;;  %v418_v10 = vld [vmem:[#allocation2 + $0x38] sm:$0xff]   ;;  %v419_v11 = vld [vmem:[#allocation2 + $0x40] sm:$0xff]   ;;  %v420_v12 = vld [vmem:[#allocation2 + $0x48] sm:$0xff]   ;;  %s451_s25 = scalar_lea.vmem %s316_s1, 128  ;;  %p456_p9 = scmp.lt.s32.totalorder %s316_s1, %s316_s1 }
  0x17   :  { %387 = vmatprep.subr.bf16.mxu0 %v480_v0  ;;  %369 = vmatprep.subr.bf16.mxu1 %v480_v0  ;;  %v421_v13 = vld [vmem:[#allocation2 + $0x58] sm:$0xff]   ;;  %v422_v14 = vld [vmem:[#allocation2 + $0x60] sm:$0xff]   ;;  %v423_v15 = vld [vmem:[#allocation2 + $0x68] sm:$0xff]   ;;  %v34_v23 = vsub.s32 0, %v33_v20  ;;  %p452_p8 = scmp.ne.s32.totalorder %s316_s1, %s451_s25  ;;  %p457_p10 = scmp.lt.s32.totalorder %s451_s25, %s451_s25 }
  0x18   :  { %v424_v16 = vld [vmem:[#allocation2 + $0x70] sm:$0xff]   ;;  %v425_v17 = vld [vmem:[#allocation2 + $0x78] sm:$0xff]   ;;  %v426_v18 = vld [vmem:[#allocation2 + $0x80] sm:$0xff]  }
  0x19   :  { %364 = vmatmul.mubr.msk.bf16.vlgmr.msra.gmra.mrb[0].mxu0 %vm36_vm2, %v31_v4  ;;  %v29_v21 = vld [vmem:[#allocation2 + $0x8] sm:$0x1]  ;;  %v428_v33 = vld [vmem:[#allocation2 + $0x90] sm:$0xff]   ;;  %v213_v44 = vld [vmem:[#allocation2 + $0x98] sm:$0x1]  ;;  %p458_p11 = por %p457_p10, %p456_p9 }
  0x1a   :  { %403 = vmatprep.mubr.msk.bf16.mxu0 %vm481_vm0, %v480_v0  ;;  %370 = vmatpush3.bf16.msra.mxu1 %v414_v6  ;;  %v30_v22 = vunpack.c.l.bf16 %v29_v21  ;;  %v427_v32 = vld [vmem:[#allocation2 + $0x88] sm:$0xff]   ;;  %v101_v34 = vld [vmem:[#allocation2 + $0x50] sm:$0x1]  ;;  %v214_v45 = vunpack.c.l.bf16 %v213_v44 }
  0x1b   :  { %371 = vmatprep.subr.bf16.mxu1 %v480_v0  ;;  %388 = vmatpush3.bf16.msra.mxu0 %v421_v13  ;;  %v102_v35 = vunpack.c.l.bf16 %v101_v34  ;;  %p459_p12 = pnand %p458_p11, %p452_p8 }
  0x1c   :  { %389 = vmatprep.subr.bf16.mxu0 %v480_v0  ;;  %v35_v24 = vrot.slane %v30_v22, %v34_v23  ;;  %v219_v46 = vrot.slane %v214_v45, %v34_v23 }
  0x1d   :  { %v107_v36 = vrot.slane %v102_v35, %v34_v23 }
  0x1e   :  { %372 = vmatpush3.bf16.msra.mxu1 %v415_v7 }
  0x1f   :  { %373 = vmatprep.subr.bf16.mxu1 %v480_v0  ;;  %390 = vmatpush3.bf16.msra.mxu0 %v422_v14 }
  0x20   :  { %391 = vmatprep.subr.bf16.mxu0 %v480_v0 }
  0x22   :  { %374 = vmatpush3.bf16.msra.mxu1 %v416_v8 }
  0x23   :  { %375 = vmatprep.subr.bf16.mxu1 %v480_v0  ;;  %392 = vmatpush3.bf16.msra.mxu0 %v423_v15 }
  0x24   :  { %393 = vmatprep.subr.bf16.mxu0 %v480_v0 }
  0x26   :  { %376 = vmatpush3.bf16.msra.mxu1 %v417_v9 }
  0x27   :  { %377 = vmatprep.subr.bf16.mxu1 %v480_v0  ;;  %394 = vmatpush3.bf16.msra.mxu0 %v424_v16 }
  0x28   :  { %395 = vmatprep.subr.bf16.mxu0 %v480_v0 }
  0x2a   :  { %378 = vmatpush3.bf16.msra.mxu1 %v418_v10 }
  0x2b   :  { %379 = vmatprep.subr.bf16.mxu1 %v480_v0  ;;  %396 = vmatpush3.bf16.msra.mxu0 %v425_v17 }
  0x2c   :  { %397 = vmatprep.subr.bf16.mxu0 %v480_v0 }
  0x2e   :  { %380 = vmatpush3.bf16.msra.mxu1 %v419_v11 }
  0x2f   :  { %381 = vmatprep.subr.bf16.mxu1 %v480_v0  ;;  %398 = vmatpush3.bf16.msra.mxu0 %v426_v18 }
  0x30   :  { %399 = vmatprep.subr.bf16.mxu0 %v480_v0 }
  0x32   :  { %382 = vmatpush3.bf16.msra.mxu1 %v420_v12 }
  0x33   :  { %400 = vmatpush3.bf16.msra.mxu0 %v427_v32 }
  0x34   :  { %401 = vmatprep.subr.bf16.mxu0 %v480_v0 }
  0x37   :  { %402 = vmatpush3.bf16.msra.mxu0 %v428_v33 }
  0xec   :  { %v78_v25 = vpop.f32.mrb[0].mxu0 }
  0xed   :  { %v79_v26 = vadd.f32 %v78_v25, %v35_v24  ;;  %v365_v27 = vpop.f32.mrb[1].mxu0 }
  0xee   :  { %v81_v28 = vpop.f32.mrb[2].mxu0 }
  0xef   :  { %v84_v29 = vmax.f32 %v79_v26, 0.0  ;;  %v366_v30 = vpop.f32.mrb[3].mxu0 }
  0xf1   :  { %v103_v31 = vpack.c.bf16 %v84_v29, %v84_v29 }
  0xf3   :  { %384 = vmatmul.mubr.bf16.vlgmr.msra.gmra.mrb[0].mxu1 %v103_v31 }
 0x1c6   :  { %v190_v37 = vpop.f32.mrb[0].mxu1 }
 0x1c7   :  { %v191_v38 = vadd.f32 %v190_v37, %v107_v36  ;;  %v385_v39 = vpop.f32.mrb[1].mxu1 }
 0x1c8   :  { %v193_v40 = vpop.f32.mrb[2].mxu1 }
 0x1c9   :  { %v196_v41 = vmax.f32 %v191_v38, 0.0  ;;  %v386_v42 = vpop.f32.mrb[3].mxu1 }
 0x1cb   :  { %v215_v43 = vpack.c.bf16 %v196_v41, %v196_v41 }
 0x1cd   :  { %404 = vmatmul.mubr.bf16.vlgmr.msra.gmra.mrb[4].mxu0 %v215_v43 }
 0x2a0   :  { %v302_v47 = vpop.f32.mrb[4].mxu0 }
 0x2a1   :  { %v303_v48 = vadd.f32 %v302_v47, %v219_v46  ;;  %v405_v49 = vpop.f32.mrb[5].mxu0 }
 0x2a2   :  { %v305_v50 = vpop.f32.mrb[6].mxu0 }
 0x2a3   :  { %308 = vst [vmem:[#allocation5] sm:$0xff] %v303_v48  ;;  %v406_v51 = vpop.f32.mrb[7].mxu0 }
 0x2a4   :  { %462 = shalt.err (!%p459_p12)
}
 0x2a5   :  { %s463_s28 = scalar_lea.hbm %s550_s2, 128 }
 0x2a6   :  { %p464_p13 = scmp.ne.s32.totalorder %s550_s2, %s463_s28  ;;  %p467_p0 = scmp.lt.u32.totalorder %s463_s28, %s550_s2 }
 0x2a8   :  { %p469_p1 = pnand %p467_p0, %p464_p13 }
 0x2aa   :  { %472 = shalt.err (!%p469_p1)
}
 0x2ab   :  { %318 = dma.vmem_to_hbm [thread:$0]  %s316_s1, 128, %s550_s2, [#allocation4]  }
 0x2ac   :  { %475 = dma.done.wait [#allocation4], 128  }
 0x2ad   :  { %476 = vsyncadd [#allocation4], 4294967168 }
 0x2ae   :  { %322 = vsyncpa [#allocation3], 1 }
 0x2af   :  { %323 = vsyncpa [#allocation4], 1 }

</bundles_post_ra>
